<compile_context>
chip_gen: v5e
topology: v5e:2x2
jax: 0.10.0
libtpu: 0.0.40
codegen_flags: <defaults>
</compile_context>

<pallas_src>
import functools

import jax
import jax.numpy as jnp
from jax.experimental import pallas as pl
from jax.experimental.pallas import tpu as pltpu

_LANE = 128      # lane width (last dim)
_SUBLANE = 8     # sublane width (second-to-last dim)
_TB = 1024       # batch-tile rows for the large-batch (tiled) path


def _round_up(v, m):
    return (v + m - 1) // m * m


def fused_two_head_kernel(x_ref, w_ref, o_ref):
    # Single MXU matmul per block: [TB, K_pad] @ [K_pad, N_pad] -> [TB, N_pad].
    # Contraction is on x's last dim / w's first dim, so no in-kernel relayout.
    x = x_ref[...]
    w = w_ref[...]
    if x.dtype != w.dtype:
        # bf16-weight path: feed the MXU in the weight's (narrow) dtype,
        # accumulate in f32 via preferred_element_type.
        x = x.astype(w.dtype)
    o_ref[...] = jnp.dot(x, w, preferred_element_type=jnp.float32).astype(o_ref.dtype)


def prepare_fused_weight(w1, w2, dtype=None):
    """Fuse the two PyTorch-style [out_f, in_f] weights into one MXU-friendly operand
    of shape [K_pad, N_pad] = [round_up(in_f,128), round_up(2*out_f,128)].

    Weights are static in the module, so this runs once (outside the hot path).
    Pass dtype=jnp.bfloat16 for MXU-native weights on v6e/v7x (f32 accumulation is
    kept inside the kernel).
    """
    out_f, in_f = w1.shape
    assert w2.shape == (out_f, in_f)
    w = jnp.concatenate([w1, w2], axis=0).T          # [in_f, 2*out_f]
    k_pad = _round_up(in_f, _LANE)
    n_pad = _round_up(2 * out_f, _LANE)
    w = jnp.pad(w, ((0, k_pad - in_f), (0, n_pad - 2 * out_f)))
    if dtype is not None:
        w = w.astype(dtype)
    return w


@functools.partial(jax.jit, static_argnames=("out_features",))
def two_head_linear(x, w_fused, out_features):
    """x: [B, in_f]; w_fused: output of prepare_fused_weight.
    Returns (y1, y2), each of shape [B, out_features], in x.dtype."""
    B, in_f = x.shape
    k_pad, n_pad = w_fused.shape
    assert in_f <= k_pad and 2 * out_features <= n_pad

    # Honest cost hint from LOGICAL dims and actual operand dtypes.
    cost = pl.CostEstimate(
        flops=2 * B * in_f * (2 * out_features),
        transcendentals=0,
        bytes_accessed=(
            B * in_f * jnp.dtype(x.dtype).itemsize
            + w_fused.size * jnp.dtype(w_fused.dtype).itemsize
            + B * (2 * out_features) * jnp.dtype(x.dtype).itemsize
        ),
    )

    b_pad = _round_up(B, _SUBLANE)

    if b_pad <= _TB:
        # ---- Small-batch path: grid-less, whole arrays resident in VMEM, single
        # kernel invocation, no per-grid-step pipeline prologue/epilogue. ----
        if b_pad != B or k_pad != in_f:
            # Zero-pad only when needed (exact: zeros contribute nothing); under jit
            # this fuses with the custom call instead of a separate HBM round trip.
            x_p = jnp.pad(x, ((0, b_pad - B), (0, k_pad - in_f)))
        else:
            x_p = x  # aligned fast path: no pad op at all

        y = pl.pallas_call(
            fused_two_head_kernel,
            out_shape=jax.ShapeDtypeStruct((b_pad, n_pad), x.dtype),
            in_specs=[
                pl.BlockSpec(memory_space=pltpu.MemorySpace.VMEM),
                pl.BlockSpec(memory_space=pltpu.MemorySpace.VMEM),
            ],
            out_specs=pl.BlockSpec(memory_space=pltpu.MemorySpace.VMEM),
            cost_estimate=cost,
        )(x_p, w_fused)
    else:
        # ---- Large-batch path: tile the batch, stream x/out through VMEM while the
        # fused weight stays resident; "parallel" axis engages both v7x TensorCores. ----
        n_blocks = pl.cdiv(b_pad, _TB)
        b_pad_t = n_blocks * _TB
        if b_pad_t != B or k_pad != in_f:
            x_p = jnp.pad(x, ((0, b_pad_t - B), (0, k_pad - in_f)))
        else:
            x_p = x

        x_itemsize = jnp.dtype(x.dtype).itemsize
        w_itemsize = jnp.dtype(w_fused.dtype).itemsize
        # Double-buffered x and out blocks + resident weight + slack; valid on
        # v7x's 64 MiB as long as the derived number fits (it does for these tiles).
        vmem_bytes = (
            2 * _TB * k_pad * x_itemsize        # x blocks (double-buffered)
            + 2 * _TB * n_pad * x_itemsize      # out blocks (double-buffered)
            + 2 * k_pad * n_pad * w_itemsize    # resident fused weight (+1 spare buf)
            + (4 << 20)                         # slack for compiler scratch
        )
        vmem_bytes = min(vmem_bytes, 48 << 20)

        y = pl.pallas_call(
            fused_two_head_kernel,
            out_shape=jax.ShapeDtypeStruct((b_pad_t, n_pad), x.dtype),
            grid_spec=pltpu.PrefetchScalarGridSpec(
                num_scalar_prefetch=0,
                grid=(n_blocks,),
                in_specs=[
                    pl.BlockSpec((_TB, k_pad), lambda i: (i, 0)),
                    pl.BlockSpec((k_pad, n_pad), lambda i: (0, 0)),  # weight resident
                ],
                out_specs=pl.BlockSpec((_TB, n_pad), lambda i: (i, 0)),
            ),
            compiler_params=pltpu.CompilerParams(
                dimension_semantics=("parallel",),
                vmem_limit_bytes=int(vmem_bytes),
            ),
            cost_estimate=cost,
        )(x_p, w_fused)

    # Un-pad and split the two heads (fused into the same jit as the call).
    y1 = y[:B, :out_features]
    y2 = y[:B, out_features:2 * out_features]
    return y1, y2


if __name__ == "__main__":
    # Small shapes consistent with the module: batch=4, in_features=32, out_features=16.
    B, in_features, out_features = 4, 32, 16

    key = jax.random.PRNGKey(0)
    kx, kw1, kw2 = jax.random.split(key, 3)

    x = jax.random.normal(kx, (B, in_features), dtype=jnp.float32)
    # Deterministic "weights1"/"weights2" (module copies externally-given weights).
    w1 = jax.random.normal(kw1, (out_features, in_features), dtype=jnp.float32)
    w2 = jax.random.normal(kw2, (out_features, in_features), dtype=jnp.float32)

    # One-time weight preparation (fuse + transpose + pad). Keep f32 here so the
    # exactness check below holds; pass dtype=jnp.bfloat16 for MXU-native weights.
    w_fused = prepare_fused_weight(w1, w2)

    y1, y2 = two_head_linear(x, w_fused, out_features)
    jax.block_until_ready((y1, y2))

    # Reference check against plain JAX (same semantics as torch.nn.Linear, bias=False).
    ref1 = x @ w1.T
    ref2 = x @ w2.T
    assert y1.shape == (B, out_features) and y2.shape == (B, out_features)
    assert jnp.allclose(y1, ref1, atol=1e-5, rtol=1e-5)
    assert jnp.allclose(y2, ref2, atol=1e-5, rtol=1e-5)

    # Also exercise the large-batch tiled ("parallel" grid) path once.
    Bl = 4096
    xl = jax.random.normal(jax.random.PRNGKey(1), (Bl, in_features), dtype=jnp.float32)
    yl1, yl2 = two_head_linear(xl, w_fused, out_features)
    jax.block_until_ready((yl1, yl2))
    assert jnp.allclose(yl1, xl @ w1.T, atol=1e-4, rtol=1e-5)
    assert jnp.allclose(yl2, xl @ w2.T, atol=1e-4, rtol=1e-5)

    print("KERNEL_OK")
</pallas_src>

<mosaic_0001>
module attributes {stable_mosaic.version = 11 : i64} {
  func.func @fused_two_head_kernel(%arg0: memref<8x128xf32, #tpu.memory_space<vmem>>, %arg1: memref<128x128xf32, #tpu.memory_space<vmem>>, %arg2: memref<8x128xf32, #tpu.memory_space<vmem>>) attributes {dimension_semantics = [], scalar_prefetch = 0 : i64, scratch_operands = 0 : i64, tpu.core_type = #tpu.core_type<tc>} {
    %c0 = arith.constant 0 : index
    %c0_0 = arith.constant 0 : index
    %0 = vector.load %arg0[%c0, %c0_0] : memref<8x128xf32, #tpu.memory_space<vmem>>, vector<8x128xf32>
    %c0_1 = arith.constant 0 : index
    %c0_2 = arith.constant 0 : index
    %1 = vector.load %arg1[%c0_1, %c0_2] : memref<128x128xf32, #tpu.memory_space<vmem>>, vector<128x128xf32>
    %cst = arith.constant dense<0.000000e+00> : vector<8x128xf32>
    %2 = tpu.matmul %0, %1, %cst {dimension_numbers = #tpu.dot_dimension_numbers<[1], [0], [0], [1], [0, 0, 1, 1], [], []>} : vector<8x128xf32>, vector<128x128xf32>, vector<8x128xf32> -> vector<8x128xf32>
    %c0_3 = arith.constant 0 : index
    %c0_4 = arith.constant 0 : index
    %3 = vector.load %arg2[%c0_3, %c0_4] : memref<8x128xf32, #tpu.memory_space<vmem>>, vector<8x128xf32>
    tpu.vector_store %arg2[%c0_3, %c0_4], %2 {strides = array<i32>} : memref<8x128xf32, #tpu.memory_space<vmem>>, vector<8x128xf32>,
    return
  }
}

</mosaic_0001>

<bundles_post_ra>
// kernel: two_head_linear.1
= control target key start
LH: loop header
LB: loop body
LE: loop exit
PB: predicated region body
PF: predicated region fallthrough
CT: control target
= control target key end

     0   :  { %7 = vsyncpa [#allocation3], 0  ;;  %s99_s12 = smov [#allocation2]   ;;  %s100_s14 = smov 128   ;;  %s126_s0 = inlined_call_operand.vmem [shape: f32[8,128], index: 0, kind: input, shape index: {}]   ;;  %s127_s1 = inlined_call_operand.hbm [shape: f32[128,128], index: 1, kind: input, shape index: {}]   ;;  %s128_s2 = inlined_call_operand.vmem [shape: f32[8,128], index: 2, kind: output, shape index: {}]  }
   0x1   :  { %s14_s11 = sshll.u32 %s127_s1, 4  ;;  %s16_s13 = sshll.u32 %s99_s12, 4  ;;  %s15_s11 = int_to_ptr.hbm [resolvable:$true] %s14_s11  ;;  %s17_s13 = int_to_ptr.vmem [resolvable:$true] %s16_s13 }
   0x2   :  { %s101_s15 = smov 8  }
   0x3   :  { %22 = dma.hbm_to_vmem [thread:$0]  %s15_s11, 2048, %s17_s13, [#allocation3], %s100_s14, %s100_s14, %s101_s15  }
   0x4   :  { %97 = dma.done.wait [#allocation3], 2048  }
   0x5   :  { %98 = vsyncadd [#allocation3], 4294965248  ;;  %v43_v0 = vld [vmem:[#allocation2 + $0x78] sm:$0xff]  ;;  %v42_v1 = vld [vmem:[#allocation2 + $0x70] sm:$0xff] }
   0x6   :  { %44 = vmatpush.msra.mxu0 %v43_v0  ;;  %v41_v2 = vld [vmem:[#allocation2 + $0x68] sm:$0xff]  ;;  %v40_v3 = vld [vmem:[#allocation2 + $0x60] sm:$0xff]  ;;  %v39_v4 = vld [vmem:[#allocation2 + $0x58] sm:$0xff] }
   0x7   :  { %v38_v5 = vld [vmem:[#allocation2 + $0x50] sm:$0xff]  ;;  %v37_v6 = vld [vmem:[#allocation2 + $0x48] sm:$0xff]  ;;  %v36_v7 = vld [vmem:[#allocation2 + $0x40] sm:$0xff] }
   0x8   :  { %45 = vmatpush.msra.mxu0 %v42_v1  ;;  %v35_v8 = vld [vmem:[#allocation2 + $0x38] sm:$0xff]  ;;  %v34_v9 = vld [vmem:[#allocation2 + $0x30] sm:$0xff]  ;;  %v33_v10 = vld [vmem:[#allocation2 + $0x28] sm:$0xff] }
   0x9   :  { %v32_v11 = vld [vmem:[#allocation2 + $0x20] sm:$0xff]  ;;  %v31_v12 = vld [vmem:[#allocation2 + $0x18] sm:$0xff]  ;;  %v30_v13 = vld [vmem:[#allocation2 + $0x10] sm:$0xff] }
   0xa   :  { %46 = vmatpush.msra.mxu0 %v41_v2  ;;  %v29_v14 = vld [vmem:[#allocation2 + $0x8] sm:$0xff]  ;;  %v28_v15 = vld [vmem:[#allocation2] sm:$0xff] }
   0xb   :  { %v27_v16 = vld [vmem:[%s126_s0] sm:$0xff] }
   0xc   :  { %47 = vmatpush.msra.mxu0 %v40_v3 }
   0xe   :  { %48 = vmatpush.msra.mxu0 %v39_v4 }
  0x10   :  { %49 = vmatpush.msra.mxu0 %v38_v5 }
  0x12   :  { %50 = vmatpush.msra.mxu0 %v37_v6 }
  0x14   :  { %51 = vmatpush.msra.mxu0 %v36_v7 }
  0x16   :  { %52 = vmatpush.msra.mxu0 %v35_v8 }
  0x18   :  { %53 = vmatpush.msra.mxu0 %v34_v9 }
  0x1a   :  { %54 = vmatpush.msra.mxu0 %v33_v10 }
  0x1c   :  { %55 = vmatpush.msra.mxu0 %v32_v11 }
  0x1e   :  { %56 = vmatpush.msra.mxu0 %v31_v12 }
  0x20   :  { %57 = vmatpush.msra.mxu0 %v30_v13 }
  0x22   :  { %58 = vmatpush.msra.mxu0 %v29_v14 }
  0x24   :  { %59 = vmatpush.msra.mxu0 %v28_v15 }
  0x25   :  { %60 = vmatmul.f32.vlgmr.msra.gmra.mxu0 %v27_v16 }
  0xa2   :  { %v61_v17 = vpop.f32.mrf.mxu0 }
  0xa3   :  { %64 = vst [vmem:[%s128_s2] sm:$0xff] %v61_v17 }
  0xa4   :  { %69 = vsyncpa [#allocation3], 1 }

</bundles_post_ra>
